<compile_context>
chip_gen: v7x
topology: tpu7x:2x2x1
jax: 0.10.0
libtpu: 0.0.40
codegen_flags: <defaults>
</compile_context>

<pallas_src>
import functools

import jax
import jax.numpy as jnp
from jax.experimental import pallas as pl
from jax.experimental.pallas import tpu as pltpu


def _round_up(n: int, m: int) -> int:
    return (n + m - 1) // m * m


def feature_resizer_kernel(x_ref, w_ref, p_ref, o_ref, *, c2_real: int, do_ln: bool):
    """x_ref: (TM, C1) activations, w_ref: (C1, C2p) bf16 weight (pre-transposed,
    lane-padded), p_ref: (3, C2p) f32 = [bias; gamma; beta], o_ref: (TM, C2p)."""
    x = x_ref[...].astype(jnp.bfloat16)                 # bf16 MXU path
    w = w_ref[...]                                      # already bf16
    b = p_ref[0:1, :]                                   # (1, C2p) f32

    # Linear: y = x @ W^T + b, accumulated in f32. Padded columns of W and b are 0,
    # so padded lanes of y are exactly 0.
    y = jnp.dot(x, w, preferred_element_type=jnp.float32) + b

    if do_ln:
        gamma = p_ref[1:2, :]                           # (1, C2p) f32 (0 in padded lanes)
        beta = p_ref[2:3, :]                            # (1, C2p) f32 (0 in padded lanes)
        inv_n = 1.0 / float(c2_real)

        # One-pass statistics over the real feature width (padded lanes contribute 0).
        mean = jnp.sum(y, axis=-1, keepdims=True) * inv_n
        mean_sq = jnp.sum(y * y, axis=-1, keepdims=True) * inv_n
        var = jnp.maximum(mean_sq - mean * mean, 0.0)   # biased variance, clamped
        inv_std = jax.lax.rsqrt(var + 1e-12)            # PyTorch LayerNorm eps
        # Padded lanes: (0 - mean) * inv_std * 0 + 0 == 0 -> stays lane-clean.
        y = (y - mean) * inv_std * gamma + beta

    # TODO(synk): Dropout is identity in eval mode; training-mode random masking
    # (pltpu.prng_seed / pltpu.prng_random_bits) is omitted here.
    o_ref[...] = y.astype(o_ref.dtype)


def prepare_feature_resizer_params(weight, bias, gamma, beta):
    """One-time (outside jit) parameter prep: transpose W to (C1, C2), cast to bf16,
    pad the output feature axis to a multiple of 128 (lane-dense), and stack
    bias/gamma/beta as f32 into a single (3, C2p) array (one constant BlockSpec)."""
    c2, _c1 = weight.shape
    c2_pad = max(_round_up(c2, 128), 128)
    w_t = weight.T.astype(jnp.bfloat16)                 # (C1, C2) bf16
    bias = bias.astype(jnp.float32)
    gamma = gamma.astype(jnp.float32)
    beta = beta.astype(jnp.float32)
    if c2_pad != c2:
        pad = c2_pad - c2
        w_t = jnp.pad(w_t, ((0, 0), (0, pad)))
        bias = jnp.pad(bias, (0, pad))
        gamma = jnp.pad(gamma, (0, pad))
        beta = jnp.pad(beta, (0, pad))
    params = jnp.stack([bias, gamma, beta], axis=0)     # (3, C2p) f32
    return w_t, params, c2


@functools.partial(jax.jit, static_argnames=("c2_real", "do_ln", "tm", "out_dtype"))
def feature_resizer(x, w_t, params, *, c2_real: int, do_ln: bool = True,
                    tm: int = 512, out_dtype=None):
    """x: [B, S, C1]; w_t: [C1, C2p] bf16 (pre-transposed, lane-padded);
    params: [3, C2p] f32. Returns [B, S, C2]."""
    B, S, C1 = x.shape
    C2p = w_t.shape[1]
    M = B * S
    out_dt = jnp.dtype(x.dtype) if out_dtype is None else jnp.dtype(out_dtype)

    # Token-tile size: 8-aligned, shrink for small inputs; prefer >= 2 grid steps so
    # ("parallel",) can use both TensorCores on v7x.
    tm_eff = min(tm, _round_up(M, 8))
    if pl.cdiv(M, tm_eff) < 2 and tm_eff > 8:
        tm_eff = max(8, _round_up(pl.cdiv(M, 2), 8))
    grid_m = pl.cdiv(M, tm_eff)                         # ragged last tile handled by Pallas

    x2d = x.reshape(M, C1)                              # free reshape, no pad / no copy

    kernel = functools.partial(feature_resizer_kernel, c2_real=c2_real, do_ln=do_ln)

    # Explicit VMEM budget (2x W in case single-buffering is not honored) + headroom.
    vmem_bytes = (
        2 * tm_eff * C1 * x.dtype.itemsize              # double-buffered x tiles
        + 2 * tm_eff * C2p * out_dt.itemsize            # double-buffered out tiles
        + 2 * C1 * C2p * w_t.dtype.itemsize             # resident W (budgeted x2)
        + 2 * 3 * C2p * params.dtype.itemsize           # resident params
        + (4 << 20)                                     # headroom
    )
    vmem_limit = int(min(max(vmem_bytes, 8 << 20), 100 << 20))

    out2d = pl.pallas_call(
        kernel,
        out_shape=jax.ShapeDtypeStruct((M, C2p), out_dt),
        grid=(grid_m,),
        in_specs=[
            pl.BlockSpec((tm_eff, C1), lambda i: (i, 0)),                # pipelined x tiles
            pl.BlockSpec((C1, C2p), lambda i: (0, 0),
                         pipeline_mode=pl.Buffered(1)),                  # resident W (single buf)
            pl.BlockSpec((3, C2p), lambda i: (0, 0),
                         pipeline_mode=pl.Buffered(1)),                  # resident params
        ],
        out_specs=pl.BlockSpec((tm_eff, C2p), lambda i: (i, 0)),
        compiler_params=pltpu.CompilerParams(
            dimension_semantics=("parallel",),
            vmem_limit_bytes=vmem_limit,
        ),
    )(x2d, w_t, params)

    if C2p != c2_real:
        # Drop padded lanes (keep the padded width if the consumer tolerates it).
        out2d = out2d[:, :c2_real]
    return out2d.reshape(B, S, c2_real)


def _reference(x, weight, bias, gamma, beta, do_ln=True, eps=1e-12):
    y = jnp.einsum("bsc,oc->bso", x, weight) + bias
    if do_ln:
        mean = jnp.mean(y, axis=-1, keepdims=True)
        var = jnp.mean((y - mean) ** 2, axis=-1, keepdims=True)
        y = (y - mean) / jnp.sqrt(var + eps) * gamma + beta
    return y


if __name__ == "__main__":
    key = jax.random.PRNGKey(0)
    B, S = 2, 8
    C1, C2 = 32, 64  # input_feat_size, output_feat_size

    k_x, k_w, k_b, k_g, k_be = jax.random.split(key, 5)
    x = jax.random.normal(k_x, (B, S, C1), dtype=jnp.float32)
    # Deterministic synthetic parameters (not loading a checkpoint).
    weight = jax.random.normal(k_w, (C2, C1), dtype=jnp.float32) * 0.05
    bias = jax.random.normal(k_b, (C2,), dtype=jnp.float32) * 0.01
    gamma = jnp.ones((C2,), dtype=jnp.float32) + 0.1 * jax.random.normal(k_g, (C2,), dtype=jnp.float32)
    beta = 0.1 * jax.random.normal(k_be, (C2,), dtype=jnp.float32)

    # One-time parameter prep (transpose + bf16 + lane padding + stacking), outside jit.
    w_t, params, c2_real = prepare_feature_resizer_params(weight, bias, gamma, beta)

    out = feature_resizer(x, w_t, params, c2_real=c2_real, do_ln=True)
    jax.block_until_ready(out)

    ref = _reference(x, weight, bias, gamma, beta, do_ln=True)
    assert out.shape == (B, S, C2), out.shape
    # bf16 matmul path -> relaxed tolerance vs. the f32 reference.
    assert jnp.allclose(out, ref, atol=2e-2, rtol=2e-2), float(jnp.max(jnp.abs(out - ref)))

    # Also exercise the do_ln=False path (Linear + identity dropout only).
    out_no_ln = feature_resizer(x, w_t, params, c2_real=c2_real, do_ln=False)
    jax.block_until_ready(out_no_ln)
    ref_no_ln = _reference(x, weight, bias, gamma, beta, do_ln=False)
    assert jnp.allclose(out_no_ln, ref_no_ln, atol=2e-2, rtol=2e-2), float(
        jnp.max(jnp.abs(out_no_ln - ref_no_ln))
    )

    print("KERNEL_OK")
</pallas_src>

<mosaic_0001>
module attributes {stable_mosaic.version = 11 : i64} {
  func.func @feature_resizer_kernel(%arg0: i32, %arg1: memref<8x32xf32, #tpu.memory_space<vmem>>, %arg2: memref<32x128xbf16, #tpu.memory_space<vmem>>, %arg3: memref<3x128xf32, #tpu.memory_space<vmem>>, %arg4: memref<8x128xf32, #tpu.memory_space<vmem>>) attributes {dimension_semantics = [#tpu.dimension_semantics<parallel>], iteration_bounds = array<i64: 2>, scalar_prefetch = 0 : i64, scratch_operands = 0 : i64, tpu.core_type = #tpu.core_type<tc>, window_params = [{transform_indices = @transform_0, window_bounds = array<i64: 8, 32>}, {pipeline_mode = #tpu.pipeline_mode<synchronous>, transform_indices = @transform_1, window_bounds = array<i64: 32, 128>}, {pipeline_mode = #tpu.pipeline_mode<synchronous>, transform_indices = @transform_2, window_bounds = array<i64: 3, 128>}, {transform_indices = @transform_3, window_bounds = array<i64: 8, 128>}]} {
    %c0 = arith.constant 0 : index
    %c0_0 = arith.constant 0 : index
    %0 = vector.load %arg1[%c0, %c0_0] : memref<8x32xf32, #tpu.memory_space<vmem>>, vector<8x32xf32>
    %1 = arith.truncf %0 : vector<8x32xf32> to vector<8x32xbf16>
    %c0_1 = arith.constant 0 : index
    %c0_2 = arith.constant 0 : index
    %2 = vector.load %arg2[%c0_1, %c0_2] : memref<32x128xbf16, #tpu.memory_space<vmem>>, vector<32x128xbf16>
    %c0_3 = arith.constant 0 : index
    %c0_4 = arith.constant 0 : index
    %3 = vector.load %arg3[%c0_3, %c0_4] : memref<3x128xf32, #tpu.memory_space<vmem>>, vector<1x128xf32>
    %cst = arith.constant dense<0.000000e+00> : vector<8x128xf32>
    %4 = tpu.matmul %1, %2, %cst {dimension_numbers = #tpu.dot_dimension_numbers<[1], [0], [0], [1], [0, 0, 1, 1], [], []>} : vector<8x32xbf16>, vector<32x128xbf16>, vector<8x128xf32> -> vector<8x128xf32>
    %5 = vector.broadcast %3 : vector<1x128xf32> to vector<8x128xf32>
    %6 = arith.addf %4, %5 : vector<8x128xf32>
    %c1 = arith.constant 1 : index
    %c0_5 = arith.constant 0 : index
    %7 = vector.load %arg3[%c1, %c0_5] : memref<3x128xf32, #tpu.memory_space<vmem>>, vector<1x128xf32>
    %c2 = arith.constant 2 : index
    %c0_6 = arith.constant 0 : index
    %8 = vector.load %arg3[%c2, %c0_6] : memref<3x128xf32, #tpu.memory_space<vmem>>, vector<1x128xf32>
    %cst_7 = arith.constant dense<0.000000e+00> : vector<8xf32>
    %9 = vector.multi_reduction <add>, %6, %cst_7 [1] : vector<8x128xf32> to vector<8xf32>
    %10 = vector.shape_cast %9 : vector<8xf32> to vector<8x1xf32>
    %cst_8 = arith.constant 1.562500e-02 : f32
    %11 = vector.broadcast %cst_8 : f32 to vector<8x1xf32>
    %12 = arith.mulf %10, %11 : vector<8x1xf32>
    %13 = arith.mulf %6, %6 : vector<8x128xf32>
    %cst_9 = arith.constant dense<0.000000e+00> : vector<8xf32>
    %14 = vector.multi_reduction <add>, %13, %cst_9 [1] : vector<8x128xf32> to vector<8xf32>
    %15 = vector.shape_cast %14 : vector<8xf32> to vector<8x1xf32>
    %cst_10 = arith.constant 1.562500e-02 : f32
    %16 = vector.broadcast %cst_10 : f32 to vector<8x1xf32>
    %17 = arith.mulf %15, %16 : vector<8x1xf32>
    %18 = arith.mulf %12, %12 : vector<8x1xf32>
    %19 = arith.subf %17, %18 : vector<8x1xf32>
    %cst_11 = arith.constant 0.000000e+00 : f32
    %20 = vector.broadcast %cst_11 : f32 to vector<8x1xf32>
    %21 = arith.maximumf %19, %20 : vector<8x1xf32>
    %cst_12 = arith.constant 9.99999996E-13 : f32
    %22 = vector.broadcast %cst_12 : f32 to vector<8x1xf32>
    %23 = arith.addf %21, %22 : vector<8x1xf32>
    %24 = math.rsqrt %23 : vector<8x1xf32>
    %25 = vector.broadcast %12 : vector<8x1xf32> to vector<8x128xf32>
    %26 = arith.subf %6, %25 : vector<8x128xf32>
    %27 = vector.broadcast %24 : vector<8x1xf32> to vector<8x128xf32>
    %28 = arith.mulf %26, %27 : vector<8x128xf32>
    %29 = vector.broadcast %7 : vector<1x128xf32> to vector<8x128xf32>
    %30 = arith.mulf %28, %29 : vector<8x128xf32>
    %31 = vector.broadcast %8 : vector<1x128xf32> to vector<8x128xf32>
    %32 = arith.addf %30, %31 : vector<8x128xf32>
    %c0_13 = arith.constant 0 : index
    %c0_14 = arith.constant 0 : index
    %33 = vector.load %arg4[%c0_13, %c0_14] : memref<8x128xf32, #tpu.memory_space<vmem>>, vector<8x128xf32>
    tpu.vector_store %arg4[%c0_13, %c0_14], %32 {strides = array<i32>} : memref<8x128xf32, #tpu.memory_space<vmem>>, vector<8x128xf32>,
    return
  }
  func.func @transform_0(%arg0: i32) -> (i32, i32) {
    %c0_i32 = arith.constant 0 : i32
    %c0_i32_0 = arith.constant 0 : i32
    return %arg0, %c0_i32 : i32, i32
  }
  func.func @transform_1(%arg0: i32) -> (i32, i32) {
    %c0_i32 = arith.constant 0 : i32
    %c0_i32_0 = arith.constant 0 : i32
    %c0_i32_1 = arith.constant 0 : i32
    return %c0_i32, %c0_i32_0 : i32, i32
  }
  func.func @transform_2(%arg0: i32) -> (i32, i32) {
    %c0_i32 = arith.constant 0 : i32
    %c0_i32_0 = arith.constant 0 : i32
    %c0_i32_1 = arith.constant 0 : i32
    return %c0_i32, %c0_i32_0 : i32, i32
  }
  func.func @transform_3(%arg0: i32) -> (i32, i32) {
    %c0_i32 = arith.constant 0 : i32
    %c0_i32_0 = arith.constant 0 : i32
    return %arg0, %c0_i32 : i32, i32
  }
}

</mosaic_0001>

<bundles_post_ra>
// kernel: feature_resizer.1
= control target key start
LH: loop header
LB: loop body
LE: loop exit
PB: predicated region body
PF: predicated region fallthrough
CT: control target
= control target key end

     0   :  { %8 = vsyncpa [#allocation3], 0  ;;  %s730_s0 = inlined_call_operand.hbm [shape: f32[16,32], index: 0, kind: input, shape index: {}]   ;;  %s731_s1 = inlined_call_operand.hbm [shape: bf16[32,128], index: 1, kind: input, shape index: {}]   ;;  %s732_s2 = inlined_call_operand.vmem [shape: f32[3,128], index: 2, kind: input, shape index: {}]   ;;  %s733_s3 = inlined_call_operand.vmem [shape: f32[16,128], index: 3, kind: output, shape index: {}]  }
   0x1   :  { %10 = vsyncpa [#allocation3 + $0x1], 0 }
   0x2   :  { %11 = vsyncpa [#allocation5], 0  ;;  %s582_s12 = smov 0   ;;  %s584_s13 = smov 0  }
   0x3   :  { %s586_s14 = smov 0   ;;  %s588_s15 = smov 0  }
   0x4 LB: > { %s601_s16 = sadd.s32 4294967295, %s554_s15   ;;  %p37_p0 = scmp.ne.s32.totalorder %s546_s13, %s542_s12  ;;  %s554_s15 = sphi %s588_s15, %s748_s15   ;;  %s550_s14 = sphi %s586_s14, %s747_s14   ;;  %s546_s13 = sphi %s584_s13, %s746_s13   ;;  %s542_s12 = sphi %s582_s12, %s745_s12  }
   0x5   : > { %p734_p1 = scmp.eq.s32.totalorder %s601_s16, 0  ;;  %p372_p2 = scmp.ge.s32.totalorder %s554_s15, 1 }
   0x6   : > { %p116_p3 = scmp.lt.s32.totalorder %s554_s15, 3  ;;  %s556_s19 = smov [#allocation4]  }
   0x7   : > { %p609_p4 = por %p734_p1, %p37_p0  ;;  %s128_s20 = sshll.u32 %s556_s19, 4  ;;  %s129_s20 = int_to_ptr.vmem [resolvable:$true] %s128_s20 }
   0x8   : > { %p613_p5 = pnand %p372_p2, %p116_p3  ;;  %s626_s22 = sadd.s32 1, %s554_s15  }
   0x9   : > { %s737_s17 = scalar_select %p609_p4, 1, 0 }
   0xa   : > { %s738_s18 = scalar_select %p613_p5, 1, 0 }
   0xb   : > { %p406_p6 = pneg %p613_p5  ;;  %s24_s23 = sadd.s32 1, %s550_s14 }
   0xc   : > { %s21_s24 = ssub.s32 %s554_s15, %s626_s22  ;;  %s458_s27 = scalar_lea.hbm %s731_s1, 256 }
   0xd   : > { %p621_p7 = pnand %p406_p6, %p734_p1  ;;  %p459_p8 = scmp.ne.s32.totalorder %s731_s1, %s458_s27 }
   0xe   : > { %p465_p12 = scmp.lt.u32.totalorder %s458_s27, %s731_s1 }
   0xf   : > { %p460_p9 = pneg %p621_p7 }
  0x11   : > { %p461_p10 = pnand %p460_p9, %p459_p8 }
  0x13   : > { %p462_p11 = pneg %p461_p10 }
  0x15   : > { %p467_p13 = pnand %p465_p12, %p462_p11 }
  0x17   : > { %470 = shalt.err (!%p467_p13)
}
  0x18   : > { %s471_s5 = scalar_lea.vmem %s129_s20, 256  ;;  %p479_p6 = scmp.lt.s32.totalorder %s129_s20, %s129_s20 }
  0x19   : > { %p472_p0 = scmp.ne.s32.totalorder %s129_s20, %s471_s5  ;;  %p480_p1 = scmp.lt.s32.totalorder %s471_s5, %s471_s5 }
  0x1b   : > { %p474_p2 = pnand %p472_p0, %p460_p9  ;;  %p481_p4 = por %p480_p1, %p479_p6 }
  0x1d   : > { %p475_p3 = pneg %p474_p2 }
  0x1f   : > { %p482_p5 = pnand %p481_p4, %p475_p3 }
  0x21   : > { %485 = shalt.err (!%p482_p5)
}
  0x22   : > { %s557_s6 = smov 64   ;;  %s558_s7 = smov 4  }
  0x23   : > { %409 = dma.hbm_to_vmem [thread:$0]  (!%p621_p7), %s731_s1, 256, %s129_s20, [#allocation5], %s557_s6, %s557_s6, %s558_s7  }
  0x24   : > { %p22_p8 = scmp.eq.s32.totalorder %s21_s24, 0  ;;  %p31_p9 = scmp.ne.s32.totalorder %s550_s14, %s546_s13 }
  0x25   : > { %p32_p1 = scmp.eq.s32.totalorder %s554_s15, 0  ;;  %p415_p4 = scmp.lt.s32.totalorder %s554_s15, 2 }
  0x26   : > { %s652_s10 = scalar_select %p22_p8, %s550_s14, %s24_s23  }
  0x27   : > { %p33_p5 = por %p32_p1, %p31_p9  ;;  %s145_s11 = sand.u32 1, %s550_s14  }
  0x28   : > { %s375_s12 = sshll.u32 %s145_s11, 3  ;;  %s376_s19 = sshll.u32 %s554_s15, 7 }
  0x29   : > { %s659_s27 = scalar_lea.hbm %s730_s0, %s376_s19  ;;  %s149_s20 = scalar_lea.vmem [#allocation2], %s375_s12 }
  0x2a   : > { %s156_s21 = sshll.u32 %s149_s20, 4  ;;  %p663_p7 = pnand %p415_p4, %p33_p5  ;;  %s661_s21 = int_to_ptr.vmem [resolvable:$true] %s156_s21 }
  0x2b   : > { %s146_s15 = scalar_lea.sflag [#allocation3], %s145_s11  ;;  %s486_s24 = scalar_lea.hbm %s659_s27, 128 }
  0x2c   : > { %p487_p10 = scmp.ne.s32.totalorder %s659_s27, %s486_s24  ;;  %p488_p11 = pneg %p663_p7 }
  0x2d   : > { %s491_s30 = scalar_lea.hbm %s730_s0, 256  ;;  %p492_p0 = scmp.lt.u32.totalorder %s659_s27, %s730_s0 }
  0x2e   : > { %p489_p12 = pnand %p488_p11, %p487_p10  ;;  %p493_p2 = scmp.lt.u32.totalorder %s491_s30, %s486_s24 }
  0x2f   : > { %p495_p6 = scmp.lt.u32.totalorder %s486_s24, %s659_s27 }
  0x30   : > { %p490_p13 = pneg %p489_p12  ;;  %p494_p3 = por %p493_p2, %p492_p0 }
  0x32   : > { %p496_p8 = por %p495_p6, %p494_p3 }
  0x34   : > { %p497_p9 = pnand %p496_p8, %p490_p13 }
  0x36   : > { %500 = shalt.err (!%p497_p9)
}
  0x37   : > { %s501_s6 = scalar_lea.vmem %s661_s21, 128  ;;  %s559_s7 = smov [#allocation2]  }
  0x38   : > { %p502_p1 = scmp.ne.s32.totalorder %s661_s21, %s501_s6  ;;  %s506_s8 = sshll.u32 %s559_s7, 4  ;;  %s507_s8 = int_to_ptr.vmem [resolvable:$false] %s506_s8 }
  0x39   : > { %s508_s9 = scalar_lea.vmem %s507_s8, 256  ;;  %p509_p10 = scmp.lt.s32.totalorder %s661_s21, %s507_s8 }
  0x3a   : > { %p504_p4 = pnand %p502_p1, %p488_p11  ;;  %p510_p12 = scmp.lt.s32.totalorder %s508_s9, %s501_s6 }
  0x3c   : > { %p505_p5 = pneg %p504_p4  ;;  %p511_p0 = por %p510_p12, %p509_p10 }
  0x3e   : > { %p512_p2 = pnand %p511_p0, %p505_p5 }
  0x40   : > { %515 = shalt.err (!%p512_p2)
}
  0x41   : > { %413 = dma.hbm_to_vmem [thread:$0]  (!%p663_p7), %s659_s27, 128, %s661_s21, %s146_s15  }
  0x42   : > { %p741_p13 = scmp.ne.s32.totalorder %s738_s18, 0 }
  0x43   : > { %s167_s11 = sand.u32 (!%p741_p13), 1, %s546_s13   ;;  %p742_p11 = scmp.ne.s32.totalorder (!%p741_p13), %s737_s17, 0 }
  0x44   : > { %165 = sbr.rel (%p741_p13) target bundleno = 474 (0x1da), region = 32  ;;  %s378_s12 = sshll.u32 (!%p741_p13), %s167_s11, 3 }
  0x45   : > { %s168_s19 = scalar_lea.sflag (!%p741_p13), [#allocation3], %s167_s11  ;;  %s171_s25 = scalar_lea.vmem (!%p741_p13), [#allocation2], %s378_s12 }
  0x4b   : > { %533 = dma.done.wait (%p742_p11), %s168_s19, 128  }
  0x4c   : > { %535 = vsyncadd (%p742_p11), %s168_s19, 4294967168  ;;  %p743_p3 = scmp.eq.s32.totalorder %s601_s16, 0 }
  0x4e   : > { %537 = dma.done.wait (%p743_p3), [#allocation5], 256   ;;  %p744_p6 = pmov %p743_p3 }
  0x4f   : > { %v560_v0 = vmov 0.0   ;;  %vm561_vm0 = vmmov 0   ;;  %v454_v1 = vld [vmem:[#allocation4] sm:$0xff]   ;;  %v455_v2 = vld [vmem:[#allocation4 + $0x8] sm:$0xff]   ;;  %v202_v3 = vld [vmem:[%s171_s25] sm:$0xff]  ;;  %vm225_vm1 = vcmask 261120  }
  0x50   : > { %539 = vsyncadd (%p744_p6), [#allocation5], 4294967040  ;;  %392 = vmatprep.subr.bf16.mxu0 %v560_v0  ;;  %396 = vmatprep.mubr.msk.bf16.mxu0 %vm561_vm0, %v560_v0  ;;  %v203_v4 = vpack.c.bf16 %v202_v3, %v202_v3  ;;  %v381_v5 = vld [vmem:[%s732_s2] ss:$0 sm:$0xff]  ;;  %p197_p7 = scmp.lt.s32.totalorder %s601_s16, 1 }
  0x51   : > { %393 = vmatpush3.bf16.msra.mxu0 %v454_v1  ;;  %v385_v22 = vld [vmem:[%s732_s2 + $0x1] ss:$0 sm:$0xff]  ;;  %v386_v24 = vld [vmem:[%s732_s2 + $0x2] ss:$0 sm:$0xff] }
  0x52   : > { %394 = vmatprep.subr.bf16.mxu0 %v560_v0  ;;  %s750_s16 = smov (!%p197_p7, %s601_s16), 1 }
  0x53   : > { %s380_s20 = sshll.u32 %s750_s16, 3 }
  0x54   : > { %s200_s28 = scalar_lea.vmem %s733_s3, %s380_s20 }
  0x55   : > { %395 = vmatpush3.bf16.msra.mxu0 %v455_v2 }
  0x58   : > { %397 = vmatmul.mubr.msk.bf16.vlgmr.msra.gmra.mrb[0].mxu0 %vm225_vm1, %v203_v4 }
 0x12b   : > { %v263_v6 = vpop.f32.mrb[0].mxu0 }
 0x12c   : > { %v264_v7 = vadd.f32 %v381_v5, %v263_v6  ;;  %v398_v8 = vpop.f32.mrb[1].mxu0 }
 0x12d   : > { %v266_v9 = vpop.f32.mrb[2].mxu0 }
 0x12e   : > { %271 = vadd.xlane.f32.xlu0 %v264_v7  ;;  %v399_v10 = vpop.f32.mrb[3].mxu0  ;;  %v274_v11 = vmul.f32 %v264_v7, %v264_v7 }
 0x132   : > { %275 = vadd.xlane.f32.xlu0 %v274_v11 }
 0x1bb   : > { %v272_v12 = vpop.xlane.xlu0 %271 }
 0x1bc   : > { %v273_v13 = vmul.f32 0.015625, %v272_v12 }
 0x1be   : > { %v278_v15 = vmul.f32 %v273_v13, %v273_v13  ;;  %v283_v20 = vsub.f32 %v264_v7, %v273_v13 }
 0x1bf   : > { %v276_v14 = vpop.xlane.xlu0 %275 }
 0x1c0   : > { %v277_v16 = vmul.f32 0.015625, %v276_v14 }
 0x1c2   : > { %v279_v17 = vsub.f32 %v277_v16, %v278_v15 }
 0x1c4   : > { %v280_v18 = vmax.f32 %v279_v17, 0.0 }
 0x1c6   : > { %v281_v19 = vadd.f32 1e-12, %v280_v18 }
 0x1c8   : > { %456 = vrsqrt.f32 %v281_v19 }
 0x1d2   : > { %v457_v21 = vpop.eup %456 }
 0x1d3   : > { %v284_v23 = vmul.f32 %v457_v21, %v283_v20 }
 0x1d5   : > { %v289_v25 = vmul.f32 %v385_v22, %v284_v23 }
 0x1d7   : > { %v294_v26 = vadd.f32 %v386_v24, %v289_v25 }
 0x1d9   : > { %295 = vst [vmem:[%s200_s28] sm:$0xff] %v294_v26 }
 0x1da PF: > { %p14_p8 = scmp.ge.s32.totalorder %s626_s22, 4   ;;  %s745_s12 = smov %s546_s13 }
 0x1db   : > { %s746_s13 = smov %s550_s14  ;;  %s747_s14 = smov %s652_s10 }
 0x1dc   : > { %s748_s15 = smov %s626_s22  ;;  %16 = sbr.rel (!%p14_p8) target bundleno = 4 (0x4), region = 76 }
 0x1e3   :  { %315 = vsyncpa [#allocation3], 1 }
 0x1e4   :  { %317 = vsyncpa [#allocation3 + $0x1], 1 }
 0x1e5   :  { %318 = vsyncpa [#allocation5], 1 }

</bundles_post_ra>
